<compile_context>
chip_gen: v5e
topology: v5e:2x2
jax: 0.10.0
libtpu: 0.0.40
codegen_flags: <defaults>
</compile_context>

<pallas_src>
import functools

import jax
import jax.numpy as jnp
from jax.experimental import pallas as pl
from jax.experimental.pallas import tpu as pltpu

_LANE = 128
_SUBLANE = 8
_BLOCK_TARGET_BYTES = 4 << 20   # ~4 MiB per block (review: 2-4 MiB sweet spot)


def _vmem_limit_bytes(block_bytes: int) -> int:
    # in + out, double-buffered, plus slack; stays well under v7x's 64 MiB
    # physical VMEM and explicitly raises v5e's 16 MiB scoped default.
    return int(min(48 << 20, max(16 << 20, 4 * block_bytes + (2 << 20))))


# ---------------------------------------------------------------------------
# Path A: large per-sample tensors, N % 128 == 0.
# ---------------------------------------------------------------------------
def _per_sample_kernel(mask_ref, x_ref, o_ref, *, inv_keep_prob):
    # mask_ref: SMEM (B,) int32 keep mask (scalar-prefetched).
    # x_ref / o_ref: VMEM block (1, tr, 128) of batch element b.
    b = pl.program_id(0)
    scale = (mask_ref[b].astype(jnp.float32) * inv_keep_prob).astype(o_ref.dtype)
    o_ref[...] = x_ref[...] * scale          # native dtype (bf16 stays bf16)


def _drop_path_per_sample(x, mask_f32, keep_prob, B, N):
    itemsize = jnp.dtype(x.dtype).itemsize
    R = N // _LANE
    xf = x.reshape(B, R, _LANE)              # zero-copy reshape, no padding

    target_rows = max(
        _SUBLANE,
        (_BLOCK_TARGET_BYTES // (_LANE * itemsize)) // _SUBLANE * _SUBLANE,
    )
    tr = R if R <= target_rows else target_rows   # multiple of 8 or full R
    n_tiles = pl.cdiv(R, tr)
    block_bytes = tr * _LANE * itemsize

    mask_i32 = mask_f32.astype(jnp.int32)
    kernel = functools.partial(_per_sample_kernel, inv_keep_prob=1.0 / keep_prob)

    yf = pl.pallas_call(
        kernel,
        out_shape=jax.ShapeDtypeStruct((B, R, _LANE), x.dtype),
        grid_spec=pltpu.PrefetchScalarGridSpec(
            num_scalar_prefetch=1,            # mask -> SMEM
            grid=(B, n_tiles),
            in_specs=[
                # Dropped samples (mask == 0) keep requesting block (b, 0, 0),
                # so Pallas skips the input DMA after the first tile of that
                # sample; the kernel still writes zeros to every output tile.
                pl.BlockSpec((1, tr, _LANE), lambda b, t, m: (b, t * m[b], 0)),
            ],
            out_specs=pl.BlockSpec((1, tr, _LANE), lambda b, t, m: (b, t, 0)),
        ),
        compiler_params=pltpu.CompilerParams(
            dimension_semantics=("parallel", "parallel"),
            vmem_limit_bytes=_vmem_limit_bytes(block_bytes),
        ),
    )(mask_i32, xf)
    return yf.reshape(x.shape)


# ---------------------------------------------------------------------------
# Path B: small per-sample tensors and/or ragged (N % 128 != 0) shapes.
# ---------------------------------------------------------------------------
def _row_scale_kernel(scale_ref, x_ref, o_ref):
    # scale_ref: (bb, 1) per-sample scale (0 or 1/keep_prob) in x's dtype.
    # x_ref / o_ref: (bb, tn) block; scale broadcasts along the lane axis.
    o_ref[...] = x_ref[...] * scale_ref[...]


def _drop_path_row_scale(x, mask_f32, keep_prob, B, N):
    itemsize = jnp.dtype(x.dtype).itemsize
    xf = x.reshape(B, N)                      # zero-copy reshape, no padding
    scale = (mask_f32 * (1.0 / keep_prob)).astype(x.dtype).reshape(B, 1)

    # Batch-block size: full B if small, otherwise a multiple of 8.
    row_bytes = max(1, N * itemsize)
    rows_wanted = max(1, _BLOCK_TARGET_BYTES // row_bytes)
    if B <= _SUBLANE or rows_wanted >= B:
        bb = B
    else:
        bb = max(_SUBLANE, (rows_wanted // _SUBLANE) * _SUBLANE)

    # Column-block size: full N if it fits the target, else a multiple of 128
    # (ragged tail block handled by Pallas with masked partial stores).
    cols_wanted = max(
        _LANE, (_BLOCK_TARGET_BYTES // (bb * itemsize)) // _LANE * _LANE
    )
    tn = N if N <= cols_wanted else cols_wanted
    block_bytes = bb * tn * itemsize

    yf = pl.pallas_call(
        _row_scale_kernel,
        out_shape=jax.ShapeDtypeStruct((B, N), x.dtype),
        grid_spec=pltpu.PrefetchScalarGridSpec(
            num_scalar_prefetch=0,
            grid=(pl.cdiv(B, bb), pl.cdiv(N, tn)),
            in_specs=[
                pl.BlockSpec((bb, 1), lambda bi, ti: (bi, 0)),
                pl.BlockSpec((bb, tn), lambda bi, ti: (bi, ti)),
            ],
            out_specs=pl.BlockSpec((bb, tn), lambda bi, ti: (bi, ti)),
        ),
        compiler_params=pltpu.CompilerParams(
            dimension_semantics=("parallel", "parallel"),
            vmem_limit_bytes=_vmem_limit_bytes(block_bytes),
        ),
    )(scale, xf)
    return yf.reshape(x.shape)


# ---------------------------------------------------------------------------
# Public API mirroring the PyTorch reference.
# ---------------------------------------------------------------------------
def drop_path(x, drop_prob: float = 0.0, training: bool = False, key=None):
    """JAX/Pallas equivalent of the reference drop_path()."""
    if drop_prob == 0.0 or not training:
        return x
    if key is None:
        raise ValueError("drop_path in training mode needs a PRNG key")

    keep_prob = 1.0 - float(drop_prob)
    B = int(x.shape[0])
    N = 1
    for d in x.shape[1:]:
        N *= int(d)
    if B == 0 or N == 0:
        return x

    # Per-sample mask = floor(keep_prob + U[0,1)), exactly like the reference.
    # (Tiny (B,)-sized RNG is wrapper glue; all broadcasted elementwise math
    #  over x runs inside the Pallas kernels.)
    u = jax.random.uniform(key, (B,), dtype=jnp.float32)
    mask_f32 = jnp.floor(keep_prob + u)

    per_sample_bytes = N * jnp.dtype(x.dtype).itemsize
    if N % _LANE == 0 and per_sample_bytes >= _BLOCK_TARGET_BYTES:
        return _drop_path_per_sample(x, mask_f32, keep_prob, B, N)
    return _drop_path_row_scale(x, mask_f32, keep_prob, B, N)


class DropPath:
    """Mirror of the PyTorch nn.Module (no parameters)."""

    def __init__(self, drop_prob=None):
        self.drop_prob = 0.0 if drop_prob is None else float(drop_prob)
        self.training = True  # PyTorch modules default to training mode

    def __call__(self, x, key=None):
        return drop_path(x, self.drop_prob, self.training, key)


# ---------------------------------------------------------------------------
# Self-test.
# ---------------------------------------------------------------------------
def _check_drop_path(x, y, drop_prob):
    keep_prob = 1.0 - drop_prob
    for b in range(x.shape[0]):
        yb = y[b]
        ref_kept = x[b] / keep_prob
        is_dropped = bool(jnp.max(jnp.abs(yb)) == 0.0)
        is_kept = bool(jnp.max(jnp.abs(yb - ref_kept)) < 1e-5)
        assert is_dropped or is_kept, f"sample {b}: not a valid drop-path output"


if __name__ == "__main__":
    root = jax.random.PRNGKey(0)
    k_x, k_d, k_x2, k_d2, k_x3, k_d3 = jax.random.split(root, 6)

    # 1) Module-spec shape (B, C, H, W) = (2, 4, 16, 16): small-sample path.
    B, C, H, W = 2, 4, 16, 16
    x = jax.random.normal(k_x, (B, C, H, W), dtype=jnp.float32)
    module = DropPath(drop_prob=0.25)
    y = jax.block_until_ready(module(x, key=k_d))
    _check_drop_path(x, y, module.drop_prob)

    # Eval path: identity.
    module.training = False
    y_eval = jax.block_until_ready(module(x))
    assert bool(jnp.array_equal(y_eval, x)), "eval mode must be identity"
    module.training = True

    # 2) Ragged shape (N % 128 != 0): no pad/slice wrapper passes.
    x2 = jax.random.normal(k_x2, (4, 3, 10, 10), dtype=jnp.float32)
    y2 = jax.block_until_ready(drop_path(x2, 0.5, True, key=k_d2))
    _check_drop_path(x2, y2, 0.5)

    # 3) Large per-sample path (Path A) with a row count not divisible by the
    #    row tile (exercises the ragged last tile + mask-driven input DMA skip).
    x3 = jax.random.normal(k_x3, (2, 4, 512, 640), dtype=jnp.float32)  # ~5 MiB/sample
    y3 = jax.block_until_ready(drop_path(x3, 0.25, True, key=k_d3))
    _check_drop_path(x3, y3, 0.25)

    print("KERNEL_OK")
</pallas_src>

<mosaic_0001>
module attributes {stable_mosaic.version = 11 : i64} {
  func.func @_row_scale_kernel(%arg0: i32, %arg1: i32, %arg2: memref<2x1xf32, #tpu.memory_space<vmem>>, %arg3: memref<2x1024xf32, #tpu.memory_space<vmem>>, %arg4: memref<2x1024xf32, #tpu.memory_space<vmem>>) attributes {dimension_semantics = [#tpu.dimension_semantics<parallel>, #tpu.dimension_semantics<parallel>], iteration_bounds = array<i64: 1, 1>, scalar_prefetch = 0 : i64, scratch_operands = 0 : i64, tpu.core_type = #tpu.core_type<tc>, window_params = [{transform_indices = @transform_0, window_bounds = array<i64: 2, 1>}, {transform_indices = @transform_1, window_bounds = array<i64: 2, 1024>}, {transform_indices = @transform_2, window_bounds = array<i64: 2, 1024>}]} {
    %c0 = arith.constant 0 : index
    %c0_0 = arith.constant 0 : index
    %0 = vector.load %arg3[%c0, %c0_0] : memref<2x1024xf32, #tpu.memory_space<vmem>>, vector<2x1024xf32>
    %c0_1 = arith.constant 0 : index
    %c0_2 = arith.constant 0 : index
    %1 = vector.load %arg2[%c0_1, %c0_2] : memref<2x1xf32, #tpu.memory_space<vmem>>, vector<2x1xf32>
    %2 = vector.broadcast %1 : vector<2x1xf32> to vector<2x1024xf32>
    %3 = arith.mulf %0, %2 : vector<2x1024xf32>
    %c0_3 = arith.constant 0 : index
    %c0_4 = arith.constant 0 : index
    %4 = vector.load %arg4[%c0_3, %c0_4] : memref<2x1024xf32, #tpu.memory_space<vmem>>, vector<2x1024xf32>
    tpu.vector_store %arg4[%c0_3, %c0_4], %3 {strides = array<i32>} : memref<2x1024xf32, #tpu.memory_space<vmem>>, vector<2x1024xf32>,
    return
  }
  func.func @transform_0(%arg0: i32, %arg1: i32) -> (i32, i32) {
    %c0_i32 = arith.constant 0 : i32
    %c0_i32_0 = arith.constant 0 : i32
    return %arg0, %c0_i32 : i32, i32
  }
  func.func @transform_1(%arg0: i32, %arg1: i32) -> (i32, i32) {
    %c0_i32 = arith.constant 0 : i32
    return %arg0, %arg1 : i32, i32
  }
  func.func @transform_2(%arg0: i32, %arg1: i32) -> (i32, i32) {
    %c0_i32 = arith.constant 0 : i32
    return %arg0, %arg1 : i32, i32
  }
}

</mosaic_0001>

<bundles_post_ra>
// kernel: tpu_custom_call.1
= control target key start
LH: loop header
LB: loop body
LE: loop exit
PB: predicated region body
PF: predicated region fallthrough
CT: control target
= control target key end

     0   :  { %7 = vsyncpa [#allocation3], 0  ;;  %s144_s0 = inlined_call_operand.vmem [shape: f32[2,1], index: 0, kind: input, shape index: {}]   ;;  %s145_s1 = inlined_call_operand.hbm [shape: f32[2,1024], index: 1, kind: input, shape index: {}]   ;;  %s146_s2 = inlined_call_operand.hbm [shape: f32[2,1024], index: 2, kind: output, shape index: {}]  }
   0x1   :  { %8 = vsyncpa [#allocation4], 0  ;;  %s16_s11 = sshll.u32 %s145_s1, 4  ;;  %s116_s12 = smov [#allocation2]   ;;  %s17_s11 = int_to_ptr.hbm [resolvable:$true] %s16_s11 }
   0x2   :  { %s18_s13 = sshll.u32 %s116_s12, 4  ;;  %s19_s13 = int_to_ptr.vmem [resolvable:$true] %s18_s13 }
   0x3   :  { %21 = dma.hbm_to_vmem [thread:$0]  %s17_s11, 256, %s19_s13, [#allocation3]  }
   0x4   :  { %112 = dma.done.wait [#allocation3], 256  }
   0x5   :  { %113 = vsyncadd [#allocation3], 4294967040  ;;  %v117_v0 = vmov 0   ;;  %v28_v1 = vld [vmem:[%s144_s0] sm:$0x3]  ;;  %v27_v7 = vld [vmem:[#allocation2 + $0x8] sm:$0xff] }
   0x6   :  { %63 = vset.pattern.permute.xlu0 %v117_v0  ;;  %v118_v2 = vmov 269488144   ;;  %v26_v6 = vld [vmem:[#allocation2] sm:$0xff]  ;;  %s119_s1 = smov [#allocation5]   ;;  %s49_s19 = sshll.u32 %s146_s2, 4  ;;  %s50_s19 = int_to_ptr.hbm [resolvable:$true] %s49_s19 }
   0x7   :  { %31 = vperm.xlu0 %63, %v28_v1   ;;  %v34_v3 = vunpack.c.l.s4 %v118_v2  ;;  %s47_s16 = sshll.u32 %s119_s1, 4  ;;  %s48_s16 = int_to_ptr.vmem [resolvable:$true] %s47_s16 }
   0x9   :  { %v35_v4 = vunpack.c.0.s8 %v34_v3 }
  0x79   :  { %v32_v5 = vpop.permute.xlu0 %31 }
  0x7a   :  { %v36_v8 = vperm.slane %v32_v5, %v35_v4 }
  0x7c   :  { %v38_v9 = vmul.f32 %v36_v8, %v26_v6  ;;  %v39_v10 = vmul.f32 %v36_v8, %v27_v7 }
  0x7e   :  { %40 = vst [vmem:[#allocation5] sm:$0xff] %v38_v9 }
  0x7f   :  { %41 = vst [vmem:[#allocation5 + $0x8] sm:$0xff] %v39_v10 }
  0x80   :  { %52 = dma.vmem_to_hbm [thread:$0]  %s48_s16, 256, %s50_s19, [#allocation4]  }
  0x81   :  { %114 = dma.done.wait [#allocation4], 256  }
  0x82   :  { %115 = vsyncadd [#allocation4], 4294967040 }
  0x83   :  { %57 = vsyncpa [#allocation3], 1 }
  0x84   :  { %58 = vsyncpa [#allocation4], 1 }

</bundles_post_ra>
